<compile_context>
chip_gen: v7x
topology: tpu7x:2x2x1
jax: 0.10.0
libtpu: 0.0.40
codegen_flags: <defaults>
</compile_context>

<pallas_src>
import jax
import jax.numpy as jnp
from jax import lax
from jax.experimental import pallas as pl
from jax.experimental.pallas import tpu as pltpu


def _pick_tile(dim, target, align):
    """Largest multiple of `align` that divides `dim` and is <= `target`.

    Falls back to the full `dim` (always a legal Pallas block extent) when no
    such tile exists, so odd shapes never hit an assert.
    """
    if dim <= target:
        return dim
    t = (target // align) * align
    while t >= align:
        if dim % t == 0:
            return t
        t -= align
    return dim


def _linear_kernel_single_k(x_ref, w_ref, b_ref, o_ref):
    """o = x @ W_tile.T + b_tile, whole reduction in one step.

    x_ref : (B, dim_in)   resident input (same block for every grid step)
    w_ref : (tn, dim_in)  weight tile in native nn.Linear layout
    b_ref : (1, tn)       bias tile
    o_ref : (B, tn)       output tile
    """
    acc = lax.dot_general(
        x_ref[...], w_ref[...],
        dimension_numbers=(((1,), (1,)), ((), ())),   # contract feature dims
        preferred_element_type=jnp.float32,
    )
    o_ref[...] = (acc + b_ref[...].astype(jnp.float32)).astype(o_ref.dtype)


def _linear_kernel_tiled_k(x_ref, w_ref, b_ref, o_ref, acc_ref):
    """One (n, k) grid step of y = x @ W.T + b with an f32 accumulator.

    x_ref  : (B, tk)   k-tile of flattened input
    w_ref  : (tn, tk)  weight tile in native nn.Linear layout
    b_ref  : (1, tn)   bias tile
    o_ref  : (B, tn)   output tile
    acc_ref: (B, tn)   f32 accumulator (persists across the k axis)
    """
    k = pl.program_id(1)

    @pl.when(k == 0)
    def _():
        acc_ref[...] = jnp.zeros_like(acc_ref)

    acc_ref[...] += lax.dot_general(
        x_ref[...], w_ref[...],
        dimension_numbers=(((1,), (1,)), ((), ())),
        preferred_element_type=jnp.float32,
    )

    @pl.when(k == pl.num_programs(1) - 1)
    def _():
        o_ref[...] = (acc_ref[...] + b_ref[...].astype(jnp.float32)).astype(
            o_ref.dtype
        )


def linear_embed(x, weight, bias):
    """Pallas implementation of LinearEmbed.forward.

    x      : (B, C, H, W)
    weight : (dim_out, dim_in)   (nn.Linear layout, NOT pre-transposed)
    bias   : (dim_out,)
    returns: (B, dim_out)
    """
    B = x.shape[0]
    dim_out, dim_in = weight.shape

    x2 = x.reshape(B, -1)                 # same semantics as torch .view(B, -1)
    assert x2.shape[1] == dim_in
    b2 = bias.reshape(1, dim_out)

    itemsize = jnp.dtype(weight.dtype).itemsize
    weight_tile_bytes = 4 * 1024 * 1024   # target bytes per weight buffer
    vmem_budget = 12 * 1024 * 1024        # conservative: fits every generation

    cp_kwargs = dict(vmem_limit_bytes=48 * 1024 * 1024)

    # ---------- Path A: single reduction step, x resident in VMEM ----------
    tn_a_target = max(128, weight_tile_bytes // max(1, dim_in * itemsize))
    if dim_out >= 256:
        # keep >= 2 output tiles so v7x can shard the parallel N axis across
        # its two TensorCores (measured no-op on v5e/v6e).
        tn_a_target = min(tn_a_target, dim_out // 2)
    tn_a = _pick_tile(dim_out, tn_a_target, 128)
    vmem_a = itemsize * (B * dim_in            # resident x
                         + 2 * tn_a * dim_in   # double-buffered weight tile
                         + 2 * B * tn_a        # double-buffered output tile
                         + 2 * tn_a)           # bias tile

    if vmem_a <= vmem_budget:
        tn = tn_a
        grid = (dim_out // tn,)
        return pl.pallas_call(
            _linear_kernel_single_k,
            out_shape=jax.ShapeDtypeStruct((B, dim_out), x.dtype),
            grid_spec=pltpu.PrefetchScalarGridSpec(
                num_scalar_prefetch=0,
                grid=grid,
                in_specs=[
                    pl.BlockSpec((B, dim_in), lambda j: (0, 0)),   # x, resident
                    pl.BlockSpec((tn, dim_in), lambda j: (j, 0)),  # W, native layout
                    pl.BlockSpec((1, tn), lambda j: (0, j)),       # bias tile
                ],
                out_specs=pl.BlockSpec((B, tn), lambda j: (0, j)),
            ),
            compiler_params=pltpu.CompilerParams(
                dimension_semantics=("parallel",),
                **cp_kwargs,
            ),
        )(x2, weight, b2)

    # ---------- Path B: k-tiled reduction with f32 accumulator -------------
    tk = _pick_tile(dim_in, 2048, 128)
    tn_target = max(128, weight_tile_bytes // max(1, tk * itemsize))
    if dim_out >= 256:
        tn_target = min(tn_target, dim_out // 2)
    tn = _pick_tile(dim_out, tn_target, 128)

    grid = (dim_out // tn, dim_in // tk)       # reduction axis last

    return pl.pallas_call(
        _linear_kernel_tiled_k,
        out_shape=jax.ShapeDtypeStruct((B, dim_out), x.dtype),
        grid_spec=pltpu.PrefetchScalarGridSpec(
            num_scalar_prefetch=0,
            grid=grid,
            in_specs=[
                pl.BlockSpec((B, tk), lambda j, k: (0, k)),    # x k-tile
                pl.BlockSpec((tn, tk), lambda j, k: (j, k)),   # W, native layout
                pl.BlockSpec((1, tn), lambda j, k: (0, j)),    # bias tile
            ],
            out_specs=pl.BlockSpec((B, tn), lambda j, k: (0, j)),
            scratch_shapes=[pltpu.VMEM((B, tn), jnp.float32)],
        ),
        compiler_params=pltpu.CompilerParams(
            dimension_semantics=("parallel", "arbitrary"),
            **cp_kwargs,
        ),
    )(x2, weight, b2)


if __name__ == "__main__":
    # Small shapes consistent with the module: x (B, C, H, W) flattened to
    # dim_in = C*H*W, projected to dim_out.
    B, C, H, W = 2, 4, 16, 16
    dim_in = C * H * W      # 1024
    dim_out = 128

    key = jax.random.PRNGKey(0)
    kx, kw, kb = jax.random.split(key, 3)

    x = jax.random.normal(kx, (B, C, H, W), dtype=jnp.float32)
    # Deterministic init mimicking nn.Linear's uniform(-1/sqrt(dim_in), 1/sqrt(dim_in))
    bound = 1.0 / (dim_in ** 0.5)
    weight = jax.random.uniform(kw, (dim_out, dim_in), jnp.float32, -bound, bound)
    bias = jax.random.uniform(kb, (dim_out,), jnp.float32, -bound, bound)

    out = linear_embed(x, weight, bias)
    out = jax.block_until_ready(out)

    # Reference check in plain JAX (same math as torch F.linear).
    ref = x.reshape(B, -1) @ weight.T + bias
    assert out.shape == (B, dim_out)
    assert jnp.allclose(out, ref, atol=1e-4, rtol=1e-4)

    print("KERNEL_OK")
</pallas_src>

<mosaic_0001>
module attributes {stable_mosaic.version = 11 : i64} {
  func.func @_linear_kernel_single_k(%arg0: i32, %arg1: memref<2x1024xf32, #tpu.memory_space<vmem>>, %arg2: memref<128x1024xf32, #tpu.memory_space<vmem>>, %arg3: memref<1x128xf32, #tpu.memory_space<vmem>>, %arg4: memref<2x128xf32, #tpu.memory_space<vmem>>) attributes {dimension_semantics = [#tpu.dimension_semantics<parallel>], iteration_bounds = array<i64: 1>, scalar_prefetch = 0 : i64, scratch_operands = 0 : i64, tpu.core_type = #tpu.core_type<tc>, window_params = [{pipeline_mode = #tpu.pipeline_mode<synchronous>, transform_indices = @transform_0, window_bounds = array<i64: 2, 1024>}, {transform_indices = @transform_1, window_bounds = array<i64: 128, 1024>}, {transform_indices = @transform_2, window_bounds = array<i64: 1, 128>}, {transform_indices = @transform_3, window_bounds = array<i64: 2, 128>}]} {
    %c0 = arith.constant 0 : index
    %c0_0 = arith.constant 0 : index
    %0 = vector.load %arg1[%c0, %c0_0] : memref<2x1024xf32, #tpu.memory_space<vmem>>, vector<2x1024xf32>
    %c0_1 = arith.constant 0 : index
    %c0_2 = arith.constant 0 : index
    %1 = vector.load %arg2[%c0_1, %c0_2] : memref<128x1024xf32, #tpu.memory_space<vmem>>, vector<128x1024xf32>
    %cst = arith.constant dense<0.000000e+00> : vector<2x128xf32>
    %2 = tpu.matmul %0, %1, %cst {dimension_numbers = #tpu.dot_dimension_numbers<[1], [1], [0], [0], [0, 0, 1, 0], [], []>} : vector<2x1024xf32>, vector<128x1024xf32>, vector<2x128xf32> -> vector<2x128xf32>
    %c0_3 = arith.constant 0 : index
    %c0_4 = arith.constant 0 : index
    %3 = vector.load %arg3[%c0_3, %c0_4] : memref<1x128xf32, #tpu.memory_space<vmem>>, vector<1x128xf32>
    %4 = vector.broadcast %3 : vector<1x128xf32> to vector<2x128xf32>
    %5 = arith.addf %2, %4 : vector<2x128xf32>
    %c0_5 = arith.constant 0 : index
    %c0_6 = arith.constant 0 : index
    %6 = vector.load %arg4[%c0_5, %c0_6] : memref<2x128xf32, #tpu.memory_space<vmem>>, vector<2x128xf32>
    tpu.vector_store %arg4[%c0_5, %c0_6], %5 {strides = array<i32>} : memref<2x128xf32, #tpu.memory_space<vmem>>, vector<2x128xf32>,
    return
  }
  func.func @transform_0(%arg0: i32) -> (i32, i32) {
    %c0_i32 = arith.constant 0 : i32
    %c0_i32_0 = arith.constant 0 : i32
    %c0_i32_1 = arith.constant 0 : i32
    return %c0_i32, %c0_i32_0 : i32, i32
  }
  func.func @transform_1(%arg0: i32) -> (i32, i32) {
    %c0_i32 = arith.constant 0 : i32
    %c0_i32_0 = arith.constant 0 : i32
    return %arg0, %c0_i32 : i32, i32
  }
  func.func @transform_2(%arg0: i32) -> (i32, i32) {
    %c0_i32 = arith.constant 0 : i32
    %c0_i32_0 = arith.constant 0 : i32
    return %c0_i32, %arg0 : i32, i32
  }
  func.func @transform_3(%arg0: i32) -> (i32, i32) {
    %c0_i32 = arith.constant 0 : i32
    %c0_i32_0 = arith.constant 0 : i32
    return %c0_i32, %arg0 : i32, i32
  }
}

</mosaic_0001>

<bundles_post_ra>
// kernel: tpu_custom_call.1
= control target key start
LH: loop header
LB: loop body
LE: loop exit
PB: predicated region body
PF: predicated region fallthrough
CT: control target
= control target key end

     0   :  { %8 = vsyncpa [#allocation3], 0  ;;  %s842_s0 = inlined_call_operand.hbm [shape: f32[2,1024], index: 0, kind: input, shape index: {}]   ;;  %s843_s1 = inlined_call_operand.hbm [shape: f32[128,1024], index: 1, kind: input, shape index: {}]   ;;  %s844_s2 = inlined_call_operand.vmem [shape: f32[1,128], index: 2, kind: input, shape index: {}]   ;;  %s845_s3 = inlined_call_operand.hbm [shape: f32[2,128], index: 3, kind: output, shape index: {}]  }
   0x1   :  { %9 = vsyncpa [#allocation6], 0 }
   0x2   :  { %10 = vsyncpa [#allocation4], 0  ;;  %s734_s12 = smov [#allocation2]   ;;  %s735_s14 = smov [#allocation5]  }
   0x3   :  { %s17_s13 = sshll.u32 %s734_s12, 4  ;;  %s26_s15 = sshll.u32 %s735_s14, 4  ;;  %s18_s13 = int_to_ptr.vmem [resolvable:$true] %s17_s13  ;;  %s760_s15 = int_to_ptr.vmem [resolvable:$true] %s26_s15 }
   0x4   :  { %s662_s18 = scalar_lea.hbm %s842_s0, 256 }
   0x5   :  { %p663_p0 = scmp.ne.s32.totalorder %s842_s0, %s662_s18  ;;  %p666_p1 = scmp.lt.u32.totalorder %s662_s18, %s842_s0 }
   0x7   :  { %p668_p2 = pnand %p666_p1, %p663_p0 }
   0x9   :  { %671 = shalt.err (!%p668_p2)
}
   0xa   :  { %s672_s23 = scalar_lea.vmem %s18_s13, 256  ;;  %p677_p4 = scmp.lt.s32.totalorder %s18_s13, %s18_s13 }
   0xb   :  { %p673_p3 = scmp.ne.s32.totalorder %s18_s13, %s672_s23  ;;  %p678_p5 = scmp.lt.s32.totalorder %s672_s23, %s672_s23 }
   0xd   :  { %p679_p6 = por %p678_p5, %p677_p4 }
   0xf   :  { %p680_p7 = pnand %p679_p6, %p673_p3 }
  0x11   :  { %683 = shalt.err (!%p680_p7)
}
  0x12   :  { %20 = dma.hbm_to_vmem [thread:$0]  %s842_s0, 256, %s18_s13, [#allocation3]  }
  0x13   :  { %s684_s28 = scalar_lea.hbm %s843_s1, 16384 }
  0x14   :  { %p685_p8 = scmp.ne.s32.totalorder %s843_s1, %s684_s28  ;;  %p688_p9 = scmp.lt.u32.totalorder %s684_s28, %s843_s1 }
  0x16   :  { %p690_p10 = pnand %p688_p9, %p685_p8 }
  0x18   :  { %693 = shalt.err (!%p690_p10)
}
  0x19   :  { %s694_s6 = scalar_lea.vmem %s760_s15, 16384  ;;  %p699_p12 = scmp.lt.s32.totalorder %s760_s15, %s760_s15 }
  0x1a   :  { %p695_p11 = scmp.ne.s32.totalorder %s760_s15, %s694_s6  ;;  %p700_p13 = scmp.lt.s32.totalorder %s694_s6, %s694_s6 }
  0x1c   :  { %p701_p0 = por %p700_p13, %p699_p12 }
  0x1e   :  { %p702_p1 = pnand %p701_p0, %p695_p11 }
  0x20   :  { %705 = shalt.err (!%p702_p1)
}
  0x21   :  { %s736_s0 = smov 1024   ;;  %s737_s7 = smov 64  }
  0x22   :  { %32 = dma.hbm_to_vmem [thread:$0]  %s843_s1, 16384, %s760_s15, [#allocation6], %s736_s0, %s736_s0, %s737_s7  }
  0x23   :  { %728 = dma.done.wait [#allocation3], 256  }
  0x24   :  { %729 = vsyncadd [#allocation3], 4294967040 }
  0x25   :  { %730 = dma.done.wait [#allocation6], 16384  }
  0x26   :  { %731 = vsyncadd [#allocation6], 4294950912  ;;  %v44_v0 = vld [vmem:[#allocation5 + $0x8] sm:$0xff]  ;;  %v43_v5 = vld [vmem:[#allocation5] sm:$0xff]  ;;  %v738_v30 = vmov 1983009808   ;;  %v184_v32 = vlaneseq }
  0x27   :  { %v52_v1 = vld [vmem:[#allocation5 + $0x48] sm:$0xff]  ;;  %v51_v6 = vld [vmem:[#allocation5 + $0x40] sm:$0xff]  ;;  %v182_v31 = vunpack.c.l.s4 %v738_v30  ;;  %v793_v52 = vld [vmem:[#allocation2] sm:$0xff]  ;;  %s739_s11 = smov [#allocation7]  }
  0x28   :  { %v48_v2 = vld [vmem:[#allocation5 + $0x28] sm:$0xff]  ;;  %v520_v3 = vpack.c.bf16 %v52_v1, %v44_v0  ;;  %v522_v8 = vpack.c.bf16 %v51_v6, %v43_v5  ;;  %v47_v9 = vld [vmem:[#allocation5 + $0x20] sm:$0xff]  ;;  %v185_v40 = vshrl.u32 %v184_v32, 7  ;;  %v799_v56 = vld [vmem:[#allocation2 + $0x8] sm:$0xff]  ;;  %s509_s12 = sshll.u32 %s739_s11, 4  ;;  %s510_s12 = int_to_ptr.vmem [resolvable:$true] %s509_s12 }
  0x29   :  { %v56_v4 = vld [vmem:[#allocation5 + $0x68] sm:$0xff]  ;;  %v55_v10 = vld [vmem:[#allocation5 + $0x60] sm:$0xff]  ;;  %v183_v39 = vunpack.c.0.s8 %v182_v31  ;;  %s706_s13 = scalar_lea.vmem %s510_s12, 32  ;;  %p711_p3 = scmp.lt.s32.totalorder %s510_s12, %s510_s12 }
  0x2a   :  { %v584_v7 = vpack.c.bf16 %v56_v4, %v48_v2  ;;  %v60_v11 = vld [vmem:[#allocation5 + $0x88] sm:$0xff]  ;;  %521 = vmatprep.subr.bf16.mxu1 %v520_v3  ;;  %v586_v12 = vpack.c.bf16 %v55_v10, %v47_v9  ;;  %v59_v18 = vld [vmem:[#allocation5 + $0x80] sm:$0xff]  ;;  %p707_p2 = scmp.ne.s32.totalorder %s510_s12, %s706_s13  ;;  %p712_p4 = scmp.lt.s32.totalorder %s706_s13, %s706_s13 }
  0x2b   :  { %v68_v13 = vld [vmem:[#allocation5 + $0xc8] sm:$0xff]  ;;  %523 = vmatpush1.bf16.xpose.msra.mxu1 %v522_v8  ;;  %v67_v19 = vld [vmem:[#allocation5 + $0xc0] sm:$0xff]  ;;  %v791_v47 = vsub.s32 %v183_v39, %v185_v40 }
  0x2c   :  { %v64_v14 = vld [vmem:[#allocation5 + $0xa8] sm:$0xff]  ;;  %585 = vmatprep.subr.bf16.mxu0 %v584_v7  ;;  %v524_v16 = vpack.c.bf16 %v68_v13, %v60_v11  ;;  %v63_v20 = vld [vmem:[#allocation5 + $0xa0] sm:$0xff]  ;;  %v526_v26 = vpack.c.bf16 %v67_v19, %v59_v18  ;;  %p713_p5 = por %p712_p4, %p711_p3 }
  0x2d   :  { %v72_v15 = vld [vmem:[#allocation5 + $0xe8] sm:$0xff]  ;;  %587 = vmatpush1.bf16.xpose.msra.mxu0 %v586_v12  ;;  %v71_v21 = vld [vmem:[#allocation5 + $0xe0] sm:$0xff]  ;;  %v797_v55 = vrot.slane %v793_v52, %v791_v47  ;;  %v803_v59 = vrot.slane %v799_v56, %v791_v47 }
  0x2e   :  { %v588_v17 = vpack.c.bf16 %v72_v15, %v64_v14  ;;  %525 = vmatprep.subr.bf16.mxu1 %v524_v16  ;;  %v76_v22 = vld [vmem:[#allocation5 + $0x108] sm:$0xff]  ;;  %v590_v27 = vpack.c.bf16 %v71_v21, %v63_v20  ;;  %v75_v33 = vld [vmem:[#allocation5 + $0x100] sm:$0xff]  ;;  %p714_p6 = pnand %p713_p5, %p707_p2 }
  0x2f   :  { %v84_v23 = vld [vmem:[#allocation5 + $0x148] sm:$0xff]  ;;  %v83_v34 = vld [vmem:[#allocation5 + $0x140] sm:$0xff]  ;;  %v195_v61 = vcombine.high %v797_v55, %v797_v55  ;;  %v212_v0 = vcombine.high %v803_v59, %v803_v59 }
  0x30   :  { %589 = vmatprep.subr.bf16.mxu0 %v588_v17  ;;  %v80_v24 = vld [vmem:[#allocation5 + $0x128] sm:$0xff]  ;;  %v528_v28 = vpack.c.bf16 %v84_v23, %v76_v22  ;;  %v79_v35 = vld [vmem:[#allocation5 + $0x120] sm:$0xff]  ;;  %v530_v43 = vpack.c.bf16 %v83_v34, %v75_v33 }
  0x31   :  { %v88_v25 = vld [vmem:[#allocation5 + $0x168] sm:$0xff]  ;;  %v87_v36 = vld [vmem:[#allocation5 + $0x160] sm:$0xff]  ;;  %286 = vmatprep.mubr.f32.mxu1 %v195_v61  ;;  %426 = vmatprep.mubr.f32.mxu0 %v212_v0  ;;  %v62_v61 = vld [vmem:[#allocation5 + $0x98] sm:$0xff] }
  0x32   :  { %v592_v29 = vpack.c.bf16 %v88_v25, %v80_v24  ;;  %v92_v37 = vld [vmem:[#allocation5 + $0x188] sm:$0xff]  ;;  %v594_v44 = vpack.c.bf16 %v87_v36, %v79_v35  ;;  %v91_v48 = vld [vmem:[#allocation5 + $0x180] sm:$0xff]  ;;  %v66_v0 = vld [vmem:[#allocation5 + $0xb8] sm:$0xff] }
  0x33   :  { %527 = vmatpush1.bf16.xpose.msra.mxu1 %v526_v26  ;;  %v100_v38 = vld [vmem:[#allocation5 + $0x1c8] sm:$0xff]  ;;  %v99_v49 = vld [vmem:[#allocation5 + $0x1c0] sm:$0xff] }
  0x34   :  { %529 = vmatprep.subr.bf16.mxu1 %v528_v28  ;;  %v96_v41 = vld [vmem:[#allocation5 + $0x1a8] sm:$0xff]  ;;  %v532_v45 = vpack.c.bf16 %v100_v38, %v92_v37  ;;  %v95_v50 = vld [vmem:[#allocation5 + $0x1a0] sm:$0xff]  ;;  %v534_v60 = vpack.c.bf16 %v99_v49, %v91_v48 }
  0x35   :  { %591 = vmatpush1.bf16.xpose.msra.mxu0 %v590_v27  ;;  %v104_v42 = vld [vmem:[#allocation5 + $0x1e8] sm:$0xff]  ;;  %v103_v51 = vld [vmem:[#allocation5 + $0x1e0] sm:$0xff] }
  0x36   :  { %593 = vmatprep.subr.bf16.mxu0 %v592_v29  ;;  %v596_v46 = vpack.c.bf16 %v104_v42, %v96_v41  ;;  %v108_v53 = vld [vmem:[#allocation5 + $0x208] sm:$0xff]  ;;  %v598_v62 = vpack.c.bf16 %v103_v51, %v95_v50  ;;  %v107_v2 = vld [vmem:[#allocation5 + $0x200] sm:$0xff]  ;;  %v46_v42 = vld [vmem:[#allocation5 + $0x18] sm:$0xff]  ;;  %v180_v50 = vcombine.high %v793_v52, %v793_v52 }
  0x37   :  { %v116_v54 = vld [vmem:[#allocation5 + $0x248] sm:$0xff]  ;;  %v115_v3 = vld [vmem:[#allocation5 + $0x240] sm:$0xff] }
  0x38   :  { %v112_v57 = vld [vmem:[#allocation5 + $0x228] sm:$0xff]  ;;  %v536_v63 = vpack.c.bf16 %v116_v54, %v108_v53  ;;  %v111_v4 = vld [vmem:[#allocation5 + $0x220] sm:$0xff]  ;;  %v538_v10 = vpack.c.bf16 %v115_v3, %v107_v2  ;;  %v197_v53 = vcombine.high %v799_v56, %v799_v56  ;;  %v45_v54 = vld [vmem:[#allocation5 + $0x10] sm:$0xff] }
  0x39   :  { %v120_v58 = vld [vmem:[#allocation5 + $0x268] sm:$0xff]  ;;  %v119_v5 = vld [vmem:[#allocation5 + $0x260] sm:$0xff] }
  0x3a   :  { %v600_v1 = vpack.c.bf16 %v120_v58, %v112_v57  ;;  %v124_v6 = vld [vmem:[#allocation5 + $0x288] sm:$0xff]  ;;  %v602_v11 = vpack.c.bf16 %v119_v5, %v111_v4  ;;  %v123_v14 = vld [vmem:[#allocation5 + $0x280] sm:$0xff]  ;;  %v53_v57 = vld [vmem:[#allocation5 + $0x50] sm:$0xff]  ;;  %v817_v52 = vrot.slane %v197_v53, %v791_v47 }
  0x3b   :  { %531 = vmatpush1.bf16.xpose.msra.mxu1 %v530_v43  ;;  %v132_v7 = vld [vmem:[#allocation5 + $0x2c8] sm:$0xff]  ;;  %v131_v15 = vld [vmem:[#allocation5 + $0x2c0] sm:$0xff]  ;;  %v54_v43 = vld [vmem:[#allocation5 + $0x58] sm:$0xff]  ;;  %v554_v2 = vpack.c.bf16 %v53_v57, %v45_v54 }
  0x3c   :  { %533 = vmatprep.subr.bf16.mxu1 %v532_v45  ;;  %v128_v8 = vld [vmem:[#allocation5 + $0x2a8] sm:$0xff]  ;;  %v540_v12 = vpack.c.bf16 %v132_v7, %v124_v6  ;;  %v127_v16 = vld [vmem:[#allocation5 + $0x2a0] sm:$0xff]  ;;  %v542_v22 = vpack.c.bf16 %v131_v15, %v123_v14  ;;  %v58_v45 = vld [vmem:[#allocation5 + $0x78] sm:$0xff]  ;;  %v552_v49 = vpack.c.bf16 %v54_v43, %v46_v42  ;;  %v213_v6 = vcombine.high %v817_v52, %v817_v52 }
  0x3d   :  { %595 = vmatpush1.bf16.xpose.msra.mxu0 %v594_v44  ;;  %v136_v9 = vld [vmem:[#allocation5 + $0x2e8] sm:$0xff]  ;;  %v135_v17 = vld [vmem:[#allocation5 + $0x2e0] sm:$0xff]  ;;  %v50_v44 = vld [vmem:[#allocation5 + $0x38] sm:$0xff] }
  0x3e   :  { %597 = vmatprep.subr.bf16.mxu0 %v596_v46  ;;  %v604_v13 = vpack.c.bf16 %v136_v9, %v128_v8  ;;  %v140_v18 = vld [vmem:[#allocation5 + $0x308] sm:$0xff]  ;;  %v606_v23 = vpack.c.bf16 %v135_v17, %v127_v16  ;;  %v139_v26 = vld [vmem:[#allocation5 + $0x300] sm:$0xff]  ;;  %v616_v51 = vpack.c.bf16 %v58_v45, %v50_v44  ;;  %v49_v58 = vld [vmem:[#allocation5 + $0x30] sm:$0xff] }
  0x3f   :  { %v148_v19 = vld [vmem:[#allocation5 + $0x348] sm:$0xff]  ;;  %v147_v27 = vld [vmem:[#allocation5 + $0x340] sm:$0xff]  ;;  %v61_v7 = vld [vmem:[#allocation5 + $0x90] sm:$0xff] }
  0x40   :  { %v144_v20 = vld [vmem:[#allocation5 + $0x328] sm:$0xff]  ;;  %v544_v24 = vpack.c.bf16 %v148_v19, %v140_v18  ;;  %v143_v28 = vld [vmem:[#allocation5 + $0x320] sm:$0xff]  ;;  %v546_v34 = vpack.c.bf16 %v147_v27, %v139_v26  ;;  %v65_v8 = vld [vmem:[#allocation5 + $0xb0] sm:$0xff] }
  0x41   :  { %v152_v21 = vld [vmem:[#allocation5 + $0x368] sm:$0xff]  ;;  %v151_v29 = vld [vmem:[#allocation5 + $0x360] sm:$0xff]  ;;  %v73_v9 = vld [vmem:[#allocation5 + $0xf0] sm:$0xff] }
  0x42   :  { %v608_v25 = vpack.c.bf16 %v152_v21, %v144_v20  ;;  %v156_v30 = vld [vmem:[#allocation5 + $0x388] sm:$0xff]  ;;  %v610_v35 = vpack.c.bf16 %v151_v29, %v143_v28  ;;  %v155_v38 = vld [vmem:[#allocation5 + $0x380] sm:$0xff]  ;;  %v622_v14 = vpack.c.bf16 %v73_v9, %v65_v8  ;;  %v85_v17 = vld [vmem:[#allocation5 + $0x150] sm:$0xff] }
  0x43   :  { %535 = vmatpush1.bf16.xpose.msra.mxu1 %v534_v60  ;;  %v164_v31 = vld [vmem:[#allocation5 + $0x3c8] sm:$0xff]  ;;  %v163_v39 = vld [vmem:[#allocation5 + $0x3c0] sm:$0xff]  ;;  %v57_v60 = vld [vmem:[#allocation5 + $0x70] sm:$0xff] }
  0x44   :  { %537 = vmatprep.subr.bf16.mxu1 %v536_v63  ;;  %v160_v32 = vld [vmem:[#allocation5 + $0x3a8] sm:$0xff]  ;;  %v548_v36 = vpack.c.bf16 %v164_v31, %v156_v30  ;;  %v159_v40 = vld [vmem:[#allocation5 + $0x3a0] sm:$0xff]  ;;  %v550_v46 = vpack.c.bf16 %v163_v39, %v155_v38  ;;  %v814_v63 = vrot.slane %v180_v50, %v791_v47  ;;  %v618_v56 = vpack.c.bf16 %v57_v60, %v49_v58  ;;  %v69_v47 = vld [vmem:[#allocation5 + $0xd0] sm:$0xff] }
  0x45   :  { %599 = vmatpush1.bf16.xpose.msra.mxu0 %v598_v62  ;;  %v168_v33 = vld [vmem:[#allocation5 + $0x3e8] sm:$0xff]  ;;  %v167_v41 = vld [vmem:[#allocation5 + $0x3e0] sm:$0xff]  ;;  %v70_v62 = vld [vmem:[#allocation5 + $0xd8] sm:$0xff] }
  0x46   :  { %601 = vmatprep.subr.bf16.mxu0 %v600_v1  ;;  %v612_v37 = vpack.c.bf16 %v168_v33, %v160_v32  ;;  %v614_v48 = vpack.c.bf16 %v167_v41, %v159_v40  ;;  %v74_v1 = vld [vmem:[#allocation5 + $0xf8] sm:$0xff]  ;;  %v556_v3 = vpack.c.bf16 %v70_v62, %v62_v61  ;;  %v196_v5 = vcombine.high %v814_v63, %v814_v63  ;;  %v81_v18 = vld [vmem:[#allocation5 + $0x130] sm:$0xff] }
  0x47   :  { %v620_v4 = vpack.c.bf16 %v74_v1, %v66_v0  ;;  %v89_v19 = vld [vmem:[#allocation5 + $0x170] sm:$0xff]  ;;  %v94_v20 = vld [vmem:[#allocation5 + $0x198] sm:$0xff] }
  0x48   :  { %v102_v21 = vld [vmem:[#allocation5 + $0x1d8] sm:$0xff]  ;;  %v93_v28 = vld [vmem:[#allocation5 + $0x190] sm:$0xff] }
  0x49   :  { %v564_v26 = vpack.c.bf16 %v102_v21, %v94_v20  ;;  %v101_v29 = vld [vmem:[#allocation5 + $0x1d0] sm:$0xff]  ;;  %v110_v32 = vld [vmem:[#allocation5 + $0x218] sm:$0xff] }
  0x4a   :  { %v97_v30 = vld [vmem:[#allocation5 + $0x1b0] sm:$0xff]  ;;  %v118_v33 = vld [vmem:[#allocation5 + $0x258] sm:$0xff] }
  0x4b   :  { %539 = vmatpush1.bf16.xpose.msra.mxu1 %v538_v10  ;;  %v78_v10 = vld [vmem:[#allocation5 + $0x118] sm:$0xff]  ;;  %v105_v31 = vld [vmem:[#allocation5 + $0x1f0] sm:$0xff]  ;;  %v568_v38 = vpack.c.bf16 %v118_v33, %v110_v32 }
  0x4c   :  { %541 = vmatprep.subr.bf16.mxu1 %v540_v12  ;;  %v82_v12 = vld [vmem:[#allocation5 + $0x138] sm:$0xff]  ;;  %v109_v40 = vld [vmem:[#allocation5 + $0x210] sm:$0xff] }
  0x4d   :  { %603 = vmatpush1.bf16.xpose.msra.mxu0 %v602_v11  ;;  %v86_v11 = vld [vmem:[#allocation5 + $0x158] sm:$0xff]  ;;  %v117_v41 = vld [vmem:[#allocation5 + $0x250] sm:$0xff] }
  0x4e   :  { %605 = vmatprep.subr.bf16.mxu0 %v604_v13  ;;  %v90_v13 = vld [vmem:[#allocation5 + $0x178] sm:$0xff]  ;;  %v560_v15 = vpack.c.bf16 %v86_v11, %v78_v10  ;;  %v113_v42 = vld [vmem:[#allocation5 + $0x230] sm:$0xff] }
  0x4f   :  { %v624_v16 = vpack.c.bf16 %v90_v13, %v82_v12  ;;  %v121_v43 = vld [vmem:[#allocation5 + $0x270] sm:$0xff]  ;;  %v126_v44 = vld [vmem:[#allocation5 + $0x298] sm:$0xff] }
  0x50   :  { %v134_v45 = vld [vmem:[#allocation5 + $0x2d8] sm:$0xff]  ;;  %v634_v50 = vpack.c.bf16 %v121_v43, %v113_v42  ;;  %v125_v54 = vld [vmem:[#allocation5 + $0x290] sm:$0xff] }
  0x51   :  { %v133_v57 = vld [vmem:[#allocation5 + $0x2d0] sm:$0xff]  ;;  %v142_v61 = vld [vmem:[#allocation5 + $0x318] sm:$0xff] }
  0x52   :  { %v129_v58 = vld [vmem:[#allocation5 + $0x2b0] sm:$0xff]  ;;  %v150_v62 = vld [vmem:[#allocation5 + $0x358] sm:$0xff] }
  0x53   :  { %543 = vmatpush1.bf16.xpose.msra.mxu1 %v542_v22  ;;  %v98_v22 = vld [vmem:[#allocation5 + $0x1b8] sm:$0xff]  ;;  %v137_v60 = vld [vmem:[#allocation5 + $0x2f0] sm:$0xff] }
  0x54   :  { %545 = vmatprep.subr.bf16.mxu1 %v544_v24  ;;  %v146_v0 = vld [vmem:[#allocation5 + $0x338] sm:$0xff]  ;;  %v519_v20 = vld [vmem:[%s844_s2] ss:$0 sm:$0xff] }
  0x55   :  { %607 = vmatpush1.bf16.xpose.msra.mxu0 %v606_v23  ;;  %v106_v23 = vld [vmem:[#allocation5 + $0x1f8] sm:$0xff] }
  0x56   :  { %609 = vmatprep.subr.bf16.mxu0 %v608_v25  ;;  %v626_v25 = vpack.c.bf16 %v89_v19, %v81_v18  ;;  %v628_v27 = vpack.c.bf16 %v106_v23, %v98_v22  ;;  %v154_v1 = vld [vmem:[#allocation5 + $0x378] sm:$0xff] }
  0x57   :  { %v158_v8 = vld [vmem:[#allocation5 + $0x398] sm:$0xff] }
  0x58   :  { %v166_v9 = vld [vmem:[#allocation5 + $0x3d8] sm:$0xff] }
  0x59   :  { %v162_v10 = vld [vmem:[#allocation5 + $0x3b8] sm:$0xff] }
  0x5a   :  { %v170_v11 = vld [vmem:[#allocation5 + $0x3f8] sm:$0xff] }
  0x5b   :  { %547 = vmatpush1.bf16.xpose.msra.mxu1 %v546_v34  ;;  %v114_v34 = vld [vmem:[#allocation5 + $0x238] sm:$0xff] }
  0x5c   :  { %549 = vmatprep.subr.bf16.mxu1 %v548_v36  ;;  %v566_v36 = vpack.c.bf16 %v101_v29, %v93_v28 }
  0x5d   :  { %611 = vmatpush1.bf16.xpose.msra.mxu0 %v610_v35  ;;  %v122_v35 = vld [vmem:[#allocation5 + $0x278] sm:$0xff] }
  0x5e   :  { %613 = vmatprep.subr.bf16.mxu0 %v612_v37  ;;  %v630_v37 = vpack.c.bf16 %v105_v31, %v97_v30  ;;  %v632_v39 = vpack.c.bf16 %v122_v35, %v114_v34 }
  0x63   :  { %551 = vmatpush1.bf16.xpose.msra.mxu1 %v550_v46  ;;  %v130_v46 = vld [vmem:[#allocation5 + $0x2b8] sm:$0xff] }
  0x64   :  { %553 = vmatprep.subr.bf16.mxu1 %v552_v49  ;;  %v570_v49 = vpack.c.bf16 %v117_v41, %v109_v40 }
  0x65   :  { %615 = vmatpush1.bf16.xpose.msra.mxu0 %v614_v48  ;;  %v138_v48 = vld [vmem:[#allocation5 + $0x2f8] sm:$0xff] }
  0x66   :  { %617 = vmatprep.subr.bf16.mxu0 %v616_v51  ;;  %v572_v51 = vpack.c.bf16 %v134_v45, %v126_v44  ;;  %v636_v53 = vpack.c.bf16 %v138_v48, %v130_v46 }
  0x6a   :  { %287 = vmatmul.mubr.f32.vlgmr.msra.gmra.mrb[0].mxu1 %v797_v55  ;;  %v558_v55 = vpack.c.bf16 %v69_v47, %v61_v7  ;;  %v145_v7 = vld [vmem:[#allocation5 + $0x330] sm:$0xff] }
  0x6b   :  { %555 = vmatpush1.bf16.xpose.msra.mxu1 %v554_v2  ;;  %356 = vmatprep.mubr.f32.mxu1 %v196_v5  ;;  %v574_v2 = vpack.c.bf16 %v133_v57, %v125_v54  ;;  %v141_v5 = vld [vmem:[#allocation5 + $0x310] sm:$0xff] }
  0x6c   :  { %427 = vmatmul.mubr.f32.vlgmr.msra.gmra.mrb[0].mxu0 %v803_v59  ;;  %557 = vmatprep.subr.bf16.mxu1 %v556_v3  ;;  %v77_v59 = vld [vmem:[#allocation5 + $0x110] sm:$0xff]  ;;  %v576_v3 = vpack.c.bf16 %v150_v62, %v142_v61 }
  0x6d   :  { %619 = vmatpush1.bf16.xpose.msra.mxu0 %v618_v56  ;;  %496 = vmatprep.mubr.f32.mxu0 %v213_v6  ;;  %v562_v24 = vpack.c.bf16 %v85_v17, %v77_v59  ;;  %v638_v56 = vpack.c.bf16 %v137_v60, %v129_v58  ;;  %v149_v6 = vld [vmem:[#allocation5 + $0x350] sm:$0xff] }
  0x6e   :  { %621 = vmatprep.subr.bf16.mxu0 %v620_v4  ;;  %v640_v4 = vpack.c.bf16 %v154_v1, %v146_v0  ;;  %v153_v47 = vld [vmem:[#allocation5 + $0x370] sm:$0xff]  ;;  %v578_v12 = vpack.c.bf16 %v149_v6, %v141_v5 }
  0x6f   :  { %v642_v13 = vpack.c.bf16 %v153_v47, %v145_v7  ;;  %v161_v59 = vld [vmem:[#allocation5 + $0x3b0] sm:$0xff] }
  0x70   :  { %v169_v17 = vld [vmem:[#allocation5 + $0x3f0] sm:$0xff] }
  0x71   :  { %v646_v19 = vpack.c.bf16 %v169_v17, %v161_v59 }
  0x73   :  { %559 = vmatpush1.bf16.xpose.msra.mxu1 %v558_v55  ;;  %v580_v55 = vpack.c.bf16 %v166_v9, %v158_v8 }
  0x74   :  { %561 = vmatprep.subr.bf16.mxu1 %v560_v15  ;;  %v157_v15 = vld [vmem:[#allocation5 + $0x390] sm:$0xff] }
  0x75   :  { %623 = vmatpush1.bf16.xpose.msra.mxu0 %v622_v14  ;;  %v644_v14 = vpack.c.bf16 %v170_v11, %v162_v10 }
  0x76   :  { %625 = vmatprep.subr.bf16.mxu0 %v624_v16  ;;  %v165_v16 = vld [vmem:[#allocation5 + $0x3d0] sm:$0xff] }
  0x77   :  { %v582_v18 = vpack.c.bf16 %v165_v16, %v157_v15 }
  0x7b   :  { %563 = vmatpush1.bf16.xpose.msra.mxu1 %v562_v24 }
  0x7c   :  { %565 = vmatprep.subr.bf16.mxu1 %v564_v26 }
  0x7d   :  { %627 = vmatpush1.bf16.xpose.msra.mxu0 %v626_v25 }
  0x7e   :  { %629 = vmatprep.subr.bf16.mxu0 %v628_v27 }
  0x83   :  { %567 = vmatpush1.bf16.xpose.msra.mxu1 %v566_v36 }
  0x84   :  { %569 = vmatprep.subr.bf16.mxu1 %v568_v38 }
  0x85   :  { %631 = vmatpush1.bf16.xpose.msra.mxu0 %v630_v37 }
  0x86   :  { %633 = vmatprep.subr.bf16.mxu0 %v632_v39 }
  0x8b   :  { %571 = vmatpush1.bf16.xpose.msra.mxu1 %v570_v49 }
  0x8c   :  { %573 = vmatprep.subr.bf16.mxu1 %v572_v51 }
  0x8d   :  { %635 = vmatpush1.bf16.xpose.msra.mxu0 %v634_v50 }
  0x8e   :  { %637 = vmatprep.subr.bf16.mxu0 %v636_v53 }
  0x93   :  { %575 = vmatpush1.bf16.xpose.msra.mxu1 %v574_v2 }
  0x94   :  { %577 = vmatprep.subr.bf16.mxu1 %v576_v3 }
  0x95   :  { %639 = vmatpush1.bf16.xpose.msra.mxu0 %v638_v56 }
  0x96   :  { %641 = vmatprep.subr.bf16.mxu0 %v640_v4 }
  0x9b   :  { %579 = vmatpush1.bf16.xpose.msra.mxu1 %v578_v12 }
  0x9c   :  { %581 = vmatprep.subr.bf16.mxu1 %v580_v55 }
  0x9d   :  { %643 = vmatpush1.bf16.xpose.msra.mxu0 %v642_v13 }
  0x9e   :  { %645 = vmatprep.subr.bf16.mxu0 %v644_v14 }
  0xa3   :  { %583 = vmatpush1.bf16.xpose.msra.mxu1 %v582_v18 }
  0xa5   :  { %647 = vmatpush1.bf16.xpose.msra.mxu0 %v646_v19 }
  0xaa   :  { %357 = vmatmul.mubr.f32.vlgmr.msra.gmra.mrb[0].mxu1 %v814_v63 }
  0xac   :  { %497 = vmatmul.mubr.f32.vlgmr.msra.gmra.mrb[0].mxu0 %v817_v52 }
 0x17d   :  { %v358_v21 = vpop.f32.mrb[0].mxu1 }
 0x17e   :  { %v648_v22 = vadd.f32 %v519_v20, %v358_v21  ;;  %v360_v24 = vpop.f32.mrb[1].mxu1 }
 0x17f   :  { %v498_v23 = vpop.f32.mrb[0].mxu0 }
 0x180   :  { %v500_v25 = vpop.f32.mrb[1].mxu0  ;;  %v649_v26 = vadd.f32 %v648_v22, %v498_v23 }
 0x182   :  { %502 = vst [vmem:[#allocation7] sm:$0x3] %v649_v26 }
 0x183   :  { %717 = shalt.err (!%p714_p6)
}
 0x184   :  { %s718_s2 = scalar_lea.hbm %s845_s3, 32 }
 0x185   :  { %p719_p7 = scmp.ne.s32.totalorder %s845_s3, %s718_s2  ;;  %p722_p8 = scmp.lt.u32.totalorder %s718_s2, %s845_s3 }
 0x187   :  { %p724_p9 = pnand %p722_p8, %p719_p7 }
 0x189   :  { %727 = shalt.err (!%p724_p9)
}
 0x18a   :  { %512 = dma.vmem_to_hbm [thread:$0]  %s510_s12, 32, %s845_s3, [#allocation4]  }
 0x18b   :  { %732 = dma.done.wait [#allocation4], 32  }
 0x18c   :  { %733 = vsyncadd [#allocation4], 4294967264 }
 0x18d   :  { %516 = vsyncpa [#allocation3], 1 }
 0x18e   :  { %517 = vsyncpa [#allocation6], 1 }
 0x18f   :  { %518 = vsyncpa [#allocation4], 1 }

</bundles_post_ra>
